<compile_context>
chip_gen: v7x
topology: tpu7x:2x2x1
jax: 0.10.0
libtpu: 0.0.40
codegen_flags: <defaults>
</compile_context>

<pallas_src>
import jax
import jax.numpy as jnp
from jax.experimental import pallas as pl
from jax.experimental.pallas import tpu as pltpu


def _linear_k_major_kernel(x_ref, w_ref, b_ref, o_ref):
    """o[0, :] = sum_k w[k, 0] * x[k, :] + b  (pure VPU/XLU, no MXU)."""
    x = x_ref[...]                      # (K, TILE_N) f32, VMEM
    w = w_ref[...]                      # (K, 1)      f32, VMEM (lane-replicated)
    b = b_ref[0]                        # scalar f32 from SMEM
    acc = jnp.sum(x * w, axis=0, keepdims=True)   # (1, TILE_N) f32
    o_ref[...] = (acc + b).astype(o_ref.dtype)


def _round_up(n, m):
    return ((n + m - 1) // m) * m


def simple_ranking_forward(x, weight, bias, *, tile_n=32768):
    """Forward of SimpleRankingModel: x @ weight.T + bias.

    x:      (N, 10) float32
    weight: (1, 10) float32   (PyTorch nn.Linear layout: (out, in))
    bias:   (1,)    float32
    returns (N, 1)  float32
    """
    n, k = x.shape
    out_features = weight.shape[0]
    assert out_features == 1, "SimpleRankingModel has a single output feature"
    assert bias.shape == (out_features,)

    # K-major layout: batch on the lane (fast) axis.  One-off transpose here;
    # ideally produced K-major upstream.
    x_t = jnp.transpose(x)              # (K, N)
    w_t = jnp.transpose(weight)         # (K, 1) column, broadcast over lanes

    if n <= tile_n:
        # Single block covering the whole batch (lane dim == full array dim,
        # always a legal block shape, even for tiny / unaligned N).
        tile = n
    else:
        # Multi-block path: tile must be a multiple of 128 lanes; the last
        # block may be partial (handled by Pallas, no jnp.pad copy).
        tile = _round_up(tile_n, 128)
    grid = (pl.cdiv(n, tile),)

    out_t = pl.pallas_call(
        _linear_k_major_kernel,
        out_shape=jax.ShapeDtypeStruct((1, n), x.dtype),
        grid=grid,
        in_specs=[
            # x: (K, TILE_N) blocks along the batch/lane axis, double-buffered.
            pl.BlockSpec((k, tile), lambda i: (0, i)),
            # weight column: constant block index -> DMA'd into VMEM once.
            pl.BlockSpec((k, 1), lambda i: (0, 0)),
            # bias: scalar resident in SMEM, no per-step DMA.
            pl.BlockSpec(memory_space=pltpu.MemorySpace.SMEM),
        ],
        out_specs=pl.BlockSpec((1, tile), lambda i: (0, i)),
        compiler_params=pltpu.CompilerParams(
            dimension_semantics=("parallel",),
        ),
        cost_estimate=pl.CostEstimate(
            flops=2 * k * n,
            transcendentals=0,
            bytes_accessed=4 * n * k + 4 * n + 4 * k + 4,
        ),
    )(x_t, w_t, bias)

    # (1, N) -> (N, 1); padded/OOB lanes were never written back.
    return out_t.reshape(n, out_features)


if __name__ == "__main__":
    key = jax.random.PRNGKey(0)
    kx, kw, kb, kx2 = jax.random.split(key, 4)

    in_features, out_features = 10, 1
    batch = 8

    # Deterministic params mimicking nn.Linear's U(-1/sqrt(fan_in), +1/sqrt(fan_in)).
    bound = 1.0 / (in_features ** 0.5)
    weight = jax.random.uniform(kw, (out_features, in_features),
                                minval=-bound, maxval=bound, dtype=jnp.float32)
    bias = jax.random.uniform(kb, (out_features,),
                              minval=-bound, maxval=bound, dtype=jnp.float32)

    x = jax.random.normal(kx, (batch, in_features), dtype=jnp.float32)

    out = jax.block_until_ready(simple_ranking_forward(x, weight, bias))
    ref = x @ weight.T + bias
    assert out.shape == (batch, out_features)
    assert jnp.allclose(out, ref, atol=1e-5, rtol=1e-5)

    # Multi-block path with a partial last block (verifies OOB output lanes
    # are dropped without any full-array padding copy).
    x2 = jax.random.normal(kx2, (300, in_features), dtype=jnp.float32)
    out2 = jax.block_until_ready(
        simple_ranking_forward(x2, weight, bias, tile_n=128))
    ref2 = x2 @ weight.T + bias
    assert out2.shape == (300, out_features)
    assert jnp.allclose(out2, ref2, atol=1e-5, rtol=1e-5)

    print("KERNEL_OK")
</pallas_src>

<mosaic_0001>
module attributes {stable_mosaic.version = 11 : i64} {
  func.func @_linear_k_major_kernel(%arg0: i32, %arg1: memref<10x8xf32, #tpu.memory_space<vmem>>, %arg2: memref<10x1xf32, #tpu.memory_space<vmem>>, %arg3: memref<1xf32, #tpu.memory_space<smem>>, %arg4: memref<1x8xf32, #tpu.memory_space<vmem>>) attributes {dimension_semantics = [#tpu.dimension_semantics<parallel>], iteration_bounds = array<i64: 1>, scalar_prefetch = 0 : i64, scratch_operands = 0 : i64, tpu.core_type = #tpu.core_type<tc>, window_params = [{transform_indices = @transform_0, window_bounds = array<i64: 10, 8>}, {pipeline_mode = #tpu.pipeline_mode<synchronous>, transform_indices = @transform_1, window_bounds = array<i64: 10, 1>}, {transform_indices = @transform_2, window_bounds = array<i64: 1>}, {transform_indices = @transform_3, window_bounds = array<i64: 1, 8>}]} {
    %c0 = arith.constant 0 : index
    %c0_0 = arith.constant 0 : index
    %0 = vector.load %arg1[%c0, %c0_0] : memref<10x8xf32, #tpu.memory_space<vmem>>, vector<10x8xf32>
    %c0_1 = arith.constant 0 : index
    %c0_2 = arith.constant 0 : index
    %1 = vector.load %arg2[%c0_1, %c0_2] : memref<10x1xf32, #tpu.memory_space<vmem>>, vector<10x1xf32>
    %c0_3 = arith.constant 0 : index
    %2 = memref.load %arg3[%c0_3] : memref<1xf32, #tpu.memory_space<smem>>
    %3 = vector.broadcast %1 : vector<10x1xf32> to vector<10x8xf32>
    %4 = arith.mulf %0, %3 : vector<10x8xf32>
    %cst = arith.constant dense<0.000000e+00> : vector<8xf32>
    %5 = vector.multi_reduction <add>, %4, %cst [0] : vector<10x8xf32> to vector<8xf32>
    %6 = vector.shape_cast %5 : vector<8xf32> to vector<1x8xf32>
    %7 = vector.broadcast %2 : f32 to vector<1x8xf32>
    %8 = arith.addf %6, %7 : vector<1x8xf32>
    %c0_4 = arith.constant 0 : index
    %c0_5 = arith.constant 0 : index
    %9 = vector.load %arg4[%c0_4, %c0_5] : memref<1x8xf32, #tpu.memory_space<vmem>>, vector<1x8xf32>
    tpu.vector_store %arg4[%c0_4, %c0_5], %8 {strides = array<i32>} : memref<1x8xf32, #tpu.memory_space<vmem>>, vector<1x8xf32>,
    return
  }
  func.func @transform_0(%arg0: i32) -> (i32, i32) {
    %c0_i32 = arith.constant 0 : i32
    %c0_i32_0 = arith.constant 0 : i32
    return %c0_i32, %arg0 : i32, i32
  }
  func.func @transform_1(%arg0: i32) -> (i32, i32) {
    %c0_i32 = arith.constant 0 : i32
    %c0_i32_0 = arith.constant 0 : i32
    %c0_i32_1 = arith.constant 0 : i32
    return %c0_i32, %c0_i32_0 : i32, i32
  }
  func.func @transform_2(%arg0: i32) -> i32 {
    %c0_i32 = arith.constant 0 : i32
    %c0_i32_0 = arith.constant 0 : i32
    return %c0_i32 : i32
  }
  func.func @transform_3(%arg0: i32) -> (i32, i32) {
    %c0_i32 = arith.constant 0 : i32
    %c0_i32_0 = arith.constant 0 : i32
    return %c0_i32, %arg0 : i32, i32
  }
}

</mosaic_0001>

<bundles_post_ra>
// kernel: tpu_custom_call.1
= control target key start
LH: loop header
LB: loop body
LE: loop exit
PB: predicated region body
PF: predicated region fallthrough
CT: control target
= control target key end

     0   :  { %v89_v1 = vmov 0   ;;  %s138_s0 = inlined_call_operand.vmem [shape: f32[10,8], index: 0, kind: input, shape index: {}]   ;;  %s139_s1 = inlined_call_operand.vmem [shape: f32[10,1], index: 1, kind: input, shape index: {}]   ;;  %s140_s2 = inlined_call_operand.<no memory space> [shape: f32[1], index: 2, kind: input, shape index: {}]   ;;  %s141_s3 = inlined_call_operand.hbm [shape: f32[1,8], index: 3, kind: output, shape index: {}]  }
   0x1   :  { %v18_v0 = vld [vmem:[%s139_s1] sm:$0xff]  ;;  %64 = vset.pattern.permute.xlu0 %v89_v1 }
   0x2   :  { %9 = vsyncpa [#allocation4], 0  ;;  %23 = vperm.xlu0 %64, %v18_v0   ;;  %v19_v2 = vld [vmem:[%s139_s1 + $0x8] sm:$0x3]  ;;  %v16_v4 = vld [vmem:[%s138_s0] sm:$0xff]  ;;  %vm33_vm0 = vcmask 64512   ;;  %v44_v17 = vstv %s140_s2 }
   0x3   :  { %v17_v5 = vld [vmem:[%s138_s0 + $0x8] sm:$0x3]  ;;  %vm35_vm1 = vcmask 58368   ;;  %s90_s21 = smov [#allocation3]   ;;  %vm46_vm2 = vcmask 57344  }
   0x4   :  { %s54_s22 = sshll.u32 %s90_s21, 4  ;;  %s55_s22 = int_to_ptr.vmem [resolvable:$true] %s54_s22 }
   0x5   :  { %s65_s0 = scalar_lea.vmem %s55_s22, 16  ;;  %s69_s23 = scalar_lea.vmem %s55_s22, 32 }
   0x6   :  { %28 = vperm.xlu0 %64, %v19_v2   ;;  %p66_p0 = scmp.ne.s32.totalorder %s55_s22, %s65_s0  ;;  %p70_p1 = scmp.lt.s32.totalorder %s55_s22, %s55_s22 }
   0x7   :  { %p71_p2 = scmp.lt.s32.totalorder %s69_s23, %s65_s0 }
   0x9   :  { %p72_p3 = por %p71_p2, %p70_p1 }
   0xb   :  { %p73_p4 = pnand %p72_p3, %p66_p0 }
  0x81   :  { %v24_v3 = vpop.permute.xlu0 %23 }
  0x82   :  { %v31_v6 = vmul.f32 %v24_v3, %v16_v4 }
  0x84   :  { %v34_v9 = vsel %vm33_vm0, %v31_v6, 0.0 }
  0x85   :  { %v29_v7 = vpop.permute.xlu0 %28 }
  0x86   :  { %v32_v8 = vmul.f32 %v29_v7, %v17_v5 }
  0x88   :  { %v36_v10 = vsel %vm35_vm1, %v32_v8, 0.0 }
  0x89   :  { %v37_v11 = vadd.f32 %v36_v10, %v34_v9 }
  0x8b   :  { %v38_v12 = vrot.slane %v37_v11, 4 }
  0x8d   :  { %v39_v13 = vadd.f32 %v38_v12, %v37_v11 }
  0x8f   :  { %v40_v14 = vrot.slane %v39_v13, 2 }
  0x91   :  { %v41_v15 = vadd.f32 %v40_v14, %v39_v13 }
  0x93   :  { %v42_v16 = vrot.slane %v41_v15, 1 }
  0x95   :  { %v43_v18 = vadd.f32 %v42_v16, %v41_v15 }
  0x97   :  { %v45_v19 = vadd.f32 %v44_v17, %v43_v18 }
  0x99   :  { %47 = vst.msk [vmem:[#allocation3] sm:$0x1] %vm46_vm2, %v45_v19 }
  0x9a   :  { %76 = shalt.err (!%p73_p4)
}
  0x9b   :  { %s77_s26 = scalar_lea.hbm %s141_s3, 16 }
  0x9c   :  { %p78_p5 = scmp.ne.s32.totalorder %s141_s3, %s77_s26  ;;  %p81_p6 = scmp.lt.u32.totalorder %s77_s26, %s141_s3 }
  0x9e   :  { %p83_p7 = pnand %p81_p6, %p78_p5 }
  0xa0   :  { %86 = shalt.err (!%p83_p7)
}
  0xa1   :  { %57 = dma.vmem_to_hbm [thread:$0]  %s55_s22, 16, %s141_s3, [#allocation4]  }
  0xa2   :  { %87 = dma.done.wait [#allocation4], 16  }
  0xa3   :  { %88 = vsyncadd [#allocation4], 4294967280 }
  0xa4   :  { %61 = vsyncpa [#allocation4], 1 }

</bundles_post_ra>
